<compile_context>
chip_gen: v6e
topology: v6e:2x2x1
jax: 0.10.0
libtpu: 0.0.40
codegen_flags: <defaults>
</compile_context>

<pallas_src>
import functools

import jax
import jax.numpy as jnp
from jax.experimental import pallas as pl
from jax.experimental.pallas import tpu as pltpu


_MAX_BATCH_BLOCK = 8             # keep the unrolled per-slice transpose loop short
_SPLIT_TRAFFIC_BYTES = 8 << 20   # only force a multi-step grid on 2-TC parts above this
_DEFAULT_VMEM_CAP = 64 << 20     # conservative default (v7x per-TC) if query fails


def _permute_021_kernel(x_ref, o_ref):
    # x_ref: (TB, C, LT) VMEM tile, o_ref: (TB, LT, C) VMEM tile.
    # Short unrolled loop of rank-2 transposes -> per-slice XLU vxpose, no
    # rank-3 relayout and no extra VMEM copy pass.  TB is capped at 8 so the
    # unroll does not inflate code size / vreg live ranges.
    # TODO(synk): compare bundle dumps against a single jnp.swapaxes(x_ref[...], 1, 2)
    # body per generation (v5e: 3 hetero XLU + 1 vst vs v6e/v7x: 2 XLU + 2 vst).
    for i in range(x_ref.shape[0]):
        o_ref[i] = x_ref[i].T


def _tpu_config():
    """Best-effort (vmem_capacity_bytes, num_tensorcores) for the local chip."""
    vmem = _DEFAULT_VMEM_CAP
    num_tc = 1
    try:
        info = pltpu.get_tpu_info()
        cap = getattr(info, "vmem_capacity_bytes", None)
        if cap:
            vmem = int(cap)
        for attr in ("num_tensorcores", "tensorcores_per_chip", "num_cores",
                     "cores_per_chip"):
            val = getattr(info, attr, None)
            if val:
                num_tc = int(val)
                break
    except Exception:  # not a TPU / query unsupported -> conservative defaults
        pass
    if num_tc <= 1:
        try:
            kind = jax.devices()[0].device_kind.lower()
            if "v7" in kind or "7x" in kind:
                num_tc = 2
        except Exception:
            pass
    return vmem, num_tc


def _largest_divisor_leq(n, cap):
    cap = max(1, min(n, cap))
    for d in range(cap, 0, -1):
        if n % d == 0:
            return d
    return 1


def _choose_l_tile(c, l, itemsize, max_slice_bytes):
    """Largest multiple-of-128 divisor of L whose (C, lt) slice fits the budget.

    Full L (contiguous input DMA) is preferred whenever it fits.  When L-tiling
    is active, the per-row strided DMA chunk lt*itemsize must be >= 512 B
    (lt >= 256 for bf16, >= 512 for int8) to keep HBM DMA efficient.
    """
    if c * l * itemsize <= max_slice_bytes:
        return l
    min_lt = max(128, -(-512 // itemsize))
    min_lt = ((min_lt + 127) // 128) * 128
    best = None
    cand = min_lt
    while cand < l:
        if l % cand == 0 and c * cand * itemsize <= max_slice_bytes:
            best = cand
        cand += 128
    # No clean 128-multiple tiling of L fits: fall back to full L; the caller
    # bounces to XLA if that cannot be double-buffered in VMEM.
    return best if best is not None else l


@functools.partial(
    jax.jit,
    static_argnames=("dims", "target_tile_bytes", "max_slice_bytes"),
)
def permute(x, dims=(0, 2, 1), *, target_tile_bytes=None, max_slice_bytes=None):
    """Pallas equivalent of torch `x.permute(*dims)`.

    The (0, 2, 1) case on a 3-D tensor (the one used in bert.py) runs through
    the Pallas kernel; identity permutations are a no-op.
    """
    dims = tuple(dims)
    if dims == tuple(range(x.ndim)):
        return x
    if not (x.ndim == 3 and dims == (0, 2, 1)):
        # TODO(synk): general N-d permutations other than (0, 2, 1) fall back to XLA.
        return jnp.transpose(x, dims)

    B, C, L = x.shape
    itemsize = jnp.dtype(x.dtype).itemsize
    if B * C * L == 0:
        return jnp.transpose(x, dims)

    # --- generation-aware budgets --------------------------------------------
    vmem_capacity, num_tc = _tpu_config()
    vmem_budget = (3 * vmem_capacity) // 4      # leave headroom under physical VMEM
    max_tile_bytes = max(1, vmem_budget // 4)   # (in + out tile) x double-buffering

    if target_tile_bytes is None:
        # Bigger tiles on 2-TC parts (v7x, 3.2 TB/s HBM) so the ~0.35 us
        # per-step overhead drops to a few percent; 4 MiB elsewhere.
        target_tile_bytes = (8 << 20) if num_tc >= 2 else (4 << 20)
    target_tile_bytes = max(1, min(int(target_tile_bytes), max_tile_bytes))

    slice_budget = target_tile_bytes if max_slice_bytes is None else int(max_slice_bytes)

    # --- tiling choices -------------------------------------------------------
    lt = _choose_l_tile(C, L, itemsize, slice_budget)
    num_l_blocks = L // lt
    slice_bytes = C * lt * itemsize

    tb = _largest_divisor_leq(
        B, min(max(1, target_tile_bytes // slice_bytes), _MAX_BATCH_BLOCK))

    # 2-TensorCore parts only: give both cores an (even) share of the work, but
    # never pay an extra grid step for tiny tensors (v5e/v6e grids are a serial
    # loop on one core, so splitting there is pure overhead).
    total_traffic = 2 * B * C * L * itemsize
    if num_tc >= 2 and total_traffic >= _SPLIT_TRAFFIC_BYTES:
        if ((B // tb) * num_l_blocks) % 2 == 1:
            for d in range(tb, 0, -1):
                if B % d == 0 and ((B // d) * num_l_blocks) % 2 == 0:
                    tb = d
                    break
    num_b_blocks = B // tb

    tile_bytes = tb * slice_bytes
    pipeline_bytes = 2 * 2 * tile_bytes  # (input tile + output tile) x double-buffering
    if pipeline_bytes > vmem_capacity - (4 << 20):
        # Huge (C, L) slice with no clean 128-multiple L tiling: cannot even
        # double-buffer one tile inside physical VMEM.
        # TODO(synk): single-buffer (pl.Buffered(1)) or a cdiv grid with masked
        # tail instead of bouncing back to XLA here.
        return jnp.transpose(x, dims)
    vmem_limit_bytes = int(
        min(max(pipeline_bytes + (1 << 20), 16 << 20), vmem_capacity - (2 << 20)))

    # TODO(synk): when C < 128 the output stores are lane-sparse (vst.msk); the
    # real fix is fusing this (0, 2, 1) permute into the consumer Conv1d/pool
    # kernel's in_spec/index_map so the standalone HBM round-trip disappears.
    return pl.pallas_call(
        _permute_021_kernel,
        out_shape=jax.ShapeDtypeStruct((B, L, C), x.dtype),
        grid_spec=pltpu.PrefetchScalarGridSpec(
            num_scalar_prefetch=0,
            grid=(num_b_blocks, num_l_blocks),
            in_specs=[pl.BlockSpec((tb, C, lt), lambda b, l: (b, 0, l))],
            out_specs=pl.BlockSpec((tb, lt, C), lambda b, l: (b, l, 0)),
        ),
        compiler_params=pltpu.CompilerParams(
            dimension_semantics=("parallel", "parallel"),
            vmem_limit_bytes=vmem_limit_bytes,
        ),
        cost_estimate=pl.CostEstimate(
            flops=0,
            transcendentals=0,
            bytes_accessed=2 * B * C * L * itemsize,
        ),
    )(x)


if __name__ == "__main__":
    key = jax.random.PRNGKey(0)
    k1, k2, k3, k4 = jax.random.split(key, 4)

    def _check(x, **kwargs):
        y = jax.block_until_ready(permute(x, (0, 2, 1), **kwargs))
        y_ref = jnp.transpose(x, (0, 2, 1))
        assert y.shape == y_ref.shape, (y.shape, y_ref.shape)
        assert y.dtype == x.dtype, (y.dtype, x.dtype)
        assert jnp.array_equal(y, y_ref), "mismatch vs reference permute"

    # BERT4NILM-like activation: (batch=2, channels/hidden=32, seq=128).
    _check(jax.random.normal(k1, (2, 32, 128), dtype=jnp.float32))
    # Multi-batch-per-block path (tb > 1), single grid step on single-TC parts.
    _check(jax.random.normal(k2, (8, 16, 256), dtype=jnp.float32))
    # bf16 path (packed sublanes, full-dim blocks).
    _check(jax.random.normal(k3, (4, 64, 128), dtype=jnp.bfloat16))
    # L-tiled path, forced at a small shape via a tiny per-slice budget.
    _check(jax.random.normal(k4, (2, 8, 512), dtype=jnp.float32), max_slice_bytes=4096)

    print("KERNEL_OK")
</pallas_src>

<mosaic_0001>
module attributes {stable_mosaic.version = 11 : i64} {
  func.func @_permute_021_kernel(%arg0: i32, %arg1: i32, %arg2: memref<2x32x128xf32, #tpu.memory_space<vmem>>, %arg3: memref<2x128x32xf32, #tpu.memory_space<vmem>>) attributes {dimension_semantics = [#tpu.dimension_semantics<parallel>, #tpu.dimension_semantics<parallel>], iteration_bounds = array<i64: 1, 1>, scalar_prefetch = 0 : i64, scratch_operands = 0 : i64, tpu.core_type = #tpu.core_type<tc>, window_params = [{transform_indices = @transform_0, window_bounds = array<i64: 2, 32, 128>}, {transform_indices = @transform_1, window_bounds = array<i64: 2, 128, 32>}]} {
    %c0 = arith.constant 0 : index
    %c0_0 = arith.constant 0 : index
    %c0_1 = arith.constant 0 : index
    %0 = vector.load %arg2[%c0, %c0_0, %c0_1] : memref<2x32x128xf32, #tpu.memory_space<vmem>>, vector<1x32x128xf32>
    %1 = vector.shape_cast %0 : vector<1x32x128xf32> to vector<32x128xf32>
    %2 = tpu.transpose %1, [1, 0] : vector<32x128xf32> -> vector<128x32xf32>
    %c0_2 = arith.constant 0 : index
    %c0_3 = arith.constant 0 : index
    %c0_4 = arith.constant 0 : index
    %3 = vector.load %arg3[%c0_2, %c0_3, %c0_4] : memref<2x128x32xf32, #tpu.memory_space<vmem>>, vector<1x128x32xf32>
    %4 = vector.shape_cast %3 : vector<1x128x32xf32> to vector<128x32xf32>
    %5 = vector.shape_cast %2 : vector<128x32xf32> to vector<1x128x32xf32>
    tpu.vector_store %arg3[%c0_2, %c0_3, %c0_4], %5 {strides = array<i32>} : memref<2x128x32xf32, #tpu.memory_space<vmem>>, vector<1x128x32xf32>,
    %c1 = arith.constant 1 : index
    %c0_5 = arith.constant 0 : index
    %c0_6 = arith.constant 0 : index
    %6 = vector.load %arg2[%c1, %c0_5, %c0_6] : memref<2x32x128xf32, #tpu.memory_space<vmem>>, vector<1x32x128xf32>
    %7 = vector.shape_cast %6 : vector<1x32x128xf32> to vector<32x128xf32>
    %8 = tpu.transpose %7, [1, 0] : vector<32x128xf32> -> vector<128x32xf32>
    %c1_7 = arith.constant 1 : index
    %c0_8 = arith.constant 0 : index
    %c0_9 = arith.constant 0 : index
    %9 = vector.load %arg3[%c1_7, %c0_8, %c0_9] : memref<2x128x32xf32, #tpu.memory_space<vmem>>, vector<1x128x32xf32>
    %10 = vector.shape_cast %9 : vector<1x128x32xf32> to vector<128x32xf32>
    %11 = vector.shape_cast %8 : vector<128x32xf32> to vector<1x128x32xf32>
    tpu.vector_store %arg3[%c1_7, %c0_8, %c0_9], %11 {strides = array<i32>} : memref<2x128x32xf32, #tpu.memory_space<vmem>>, vector<1x128x32xf32>,
    return
  }
  func.func @transform_0(%arg0: i32, %arg1: i32) -> (i32, i32, i32) {
    %c0_i32 = arith.constant 0 : i32
    %c0_i32_0 = arith.constant 0 : i32
    return %arg0, %c0_i32, %arg1 : i32, i32, i32
  }
  func.func @transform_1(%arg0: i32, %arg1: i32) -> (i32, i32, i32) {
    %c0_i32 = arith.constant 0 : i32
    %c0_i32_0 = arith.constant 0 : i32
    return %arg0, %arg1, %c0_i32 : i32, i32, i32
  }
}

</mosaic_0001>

<bundles_post_ra>
// kernel: permute.1
= control target key start
LH: loop header
LB: loop body
LE: loop exit
PB: predicated region body
PF: predicated region fallthrough
CT: control target
= control target key end

     0   :  { %6 = vsyncpa [#allocation3], 0  ;;  %s176_s6 = smov [#allocation2]   ;;  %s320_s0 = inlined_call_operand.hbm [shape: f32[2,32,128], index: 0, kind: input, shape index: {}]   ;;  %s321_s1 = inlined_call_operand.vmem [shape: f32[2,128,32], index: 1, kind: output, shape index: {}]  }
   0x1   :  { %s12_s7 = sshll.u32 %s176_s6, 4  ;;  %s13_s7 = int_to_ptr.vmem [resolvable:$true] %s12_s7 }
   0x2   :  { %s162_s8 = scalar_lea.vmem %s13_s7, 1024  ;;  %p167_p1 = scmp.lt.s32.totalorder %s13_s7, %s13_s7 }
   0x3   :  { %p163_p0 = scmp.ne.s32.totalorder %s13_s7, %s162_s8  ;;  %p168_p2 = scmp.lt.s32.totalorder %s162_s8, %s162_s8 }
   0x5   :  { %p169_p3 = por %p168_p2, %p167_p1 }
   0x7   :  { %p170_p4 = pnand %p169_p3, %p163_p0 }
   0x9   :  { %173 = shalt.err (!%p170_p4)
}
   0xa   :  { %s177_s9 = smov 128   ;;  %s178_s10 = smov 8  }
   0xb   :  { %18 = dma.hbm_to_vmem [thread:$0]  %s320_s0, 1024, %s13_s7, [#allocation3], %s177_s9, %s177_s9, %s178_s10  }
   0xc   :  { %174 = dma.done.wait [#allocation3], 1024  }
   0xd   :  { %175 = vsyncadd [#allocation3], 4294966272  ;;  %v76_v0 = vld [vmem:[#allocation2 + $0x20] sm:$0xff]  ;;  %v77_v2 = vld [vmem:[#allocation2 + $0x28] sm:$0xff]  ;;  %vm58_vm0 = vcmask 261120  }
   0xe   :  { %v22_v1 = vld [vmem:[#allocation2] sm:$0xff]  ;;  %80 = vxpose.xlu1.b32.start [1/4] (short) %v76_v0, 128  ;;  %v23_v3 = vld [vmem:[#allocation2 + $0x8] sm:$0xff]  ;;  %v78_v4 = vld [vmem:[#allocation2 + $0x30] sm:$0xff] }
   0xf   :  { %26 = vxpose.xlu0.b32.start [1/4] (short) %v22_v1, 128  ;;  %v24_v5 = vld [vmem:[#allocation2 + $0x10] sm:$0xff]  ;;  %v79_v6 = vld [vmem:[#allocation2 + $0x38] sm:$0xff] }
  0x10   :  { %v25_v7 = vld [vmem:[#allocation2 + $0x18] sm:$0xff] }
  0x12   :  { %81 = vxpose.xlu1.b32.cont [2/4] (short) %v77_v2, 128 }
  0x13   :  { %27 = vxpose.xlu0.b32.cont [2/4] (short) %v23_v3, 128 }
  0x16   :  { %82 = vxpose.xlu1.b32.cont [3/4] (short) %v78_v4, 128 }
  0x17   :  { %28 = vxpose.xlu0.b32.cont [3/4] (short) %v24_v5, 128 }
  0x1a   :  { %83 = vxpose.xlu1.b32.end [4/4] (short) %v79_v6, 128 }
  0x1b   :  { %29 = vxpose.xlu0.b32.end [4/4] (short) %v25_v7, 128 }
  0x8a   :  { %v96_v8 = vpop.trf.xlu1 }
  0x8b   :  { %v42_v9 = vpop.trf.xlu0  ;;  %134 = vst.msk [vmem:[%s321_s1 + $0x80] sm:$0xff] %vm58_vm0, %v96_v8 }
  0x8c   :  { %59 = vst.msk [vmem:[%s321_s1] sm:$0xff] %vm58_vm0, %v42_v9 }
  0x8e   :  { %v97_v10 = vpop.trf.xlu1 }
  0x8f   :  { %v43_v11 = vpop.trf.xlu0  ;;  %135 = vst.msk [vmem:[%s321_s1 + $0x88] sm:$0xff] %vm58_vm0, %v97_v10 }
  0x90   :  { %60 = vst.msk [vmem:[%s321_s1 + $0x8] sm:$0xff] %vm58_vm0, %v43_v11 }
  0x92   :  { %v98_v12 = vpop.trf.xlu1 }
  0x93   :  { %v44_v13 = vpop.trf.xlu0  ;;  %136 = vst.msk [vmem:[%s321_s1 + $0x90] sm:$0xff] %vm58_vm0, %v98_v12 }
  0x94   :  { %61 = vst.msk [vmem:[%s321_s1 + $0x10] sm:$0xff] %vm58_vm0, %v44_v13 }
  0x96   :  { %v99_v14 = vpop.trf.xlu1 }
  0x97   :  { %v45_v15 = vpop.trf.xlu0  ;;  %137 = vst.msk [vmem:[%s321_s1 + $0x98] sm:$0xff] %vm58_vm0, %v99_v14 }
  0x98   :  { %62 = vst.msk [vmem:[%s321_s1 + $0x18] sm:$0xff] %vm58_vm0, %v45_v15 }
  0x9a   :  { %v100_v16 = vpop.trf.xlu1 }
  0x9b   :  { %v46_v17 = vpop.trf.xlu0  ;;  %138 = vst.msk [vmem:[%s321_s1 + $0xa0] sm:$0xff] %vm58_vm0, %v100_v16 }
  0x9c   :  { %63 = vst.msk [vmem:[%s321_s1 + $0x20] sm:$0xff] %vm58_vm0, %v46_v17 }
  0x9e   :  { %v101_v18 = vpop.trf.xlu1 }
  0x9f   :  { %v47_v19 = vpop.trf.xlu0  ;;  %139 = vst.msk [vmem:[%s321_s1 + $0xa8] sm:$0xff] %vm58_vm0, %v101_v18 }
  0xa0   :  { %64 = vst.msk [vmem:[%s321_s1 + $0x28] sm:$0xff] %vm58_vm0, %v47_v19 }
  0xa2   :  { %v102_v20 = vpop.trf.xlu1 }
  0xa3   :  { %v48_v21 = vpop.trf.xlu0  ;;  %140 = vst.msk [vmem:[%s321_s1 + $0xb0] sm:$0xff] %vm58_vm0, %v102_v20 }
  0xa4   :  { %65 = vst.msk [vmem:[%s321_s1 + $0x30] sm:$0xff] %vm58_vm0, %v48_v21 }
  0xa6   :  { %v103_v22 = vpop.trf.xlu1 }
  0xa7   :  { %v49_v23 = vpop.trf.xlu0  ;;  %141 = vst.msk [vmem:[%s321_s1 + $0xb8] sm:$0xff] %vm58_vm0, %v103_v22 }
  0xa8   :  { %66 = vst.msk [vmem:[%s321_s1 + $0x38] sm:$0xff] %vm58_vm0, %v49_v23 }
  0xaa   :  { %v104_v24 = vpop.trf.xlu1 }
  0xab   :  { %v50_v25 = vpop.trf.xlu0  ;;  %142 = vst.msk [vmem:[%s321_s1 + $0xc0] sm:$0xff] %vm58_vm0, %v104_v24 }
  0xac   :  { %67 = vst.msk [vmem:[%s321_s1 + $0x40] sm:$0xff] %vm58_vm0, %v50_v25 }
  0xae   :  { %v105_v26 = vpop.trf.xlu1 }
  0xaf   :  { %v51_v27 = vpop.trf.xlu0  ;;  %143 = vst.msk [vmem:[%s321_s1 + $0xc8] sm:$0xff] %vm58_vm0, %v105_v26 }
  0xb0   :  { %68 = vst.msk [vmem:[%s321_s1 + $0x48] sm:$0xff] %vm58_vm0, %v51_v27 }
  0xb2   :  { %v106_v28 = vpop.trf.xlu1 }
  0xb3   :  { %v52_v29 = vpop.trf.xlu0  ;;  %144 = vst.msk [vmem:[%s321_s1 + $0xd0] sm:$0xff] %vm58_vm0, %v106_v28 }
  0xb4   :  { %69 = vst.msk [vmem:[%s321_s1 + $0x50] sm:$0xff] %vm58_vm0, %v52_v29 }
  0xb6   :  { %v107_v30 = vpop.trf.xlu1 }
  0xb7   :  { %v53_v31 = vpop.trf.xlu0  ;;  %145 = vst.msk [vmem:[%s321_s1 + $0xd8] sm:$0xff] %vm58_vm0, %v107_v30 }
  0xb8   :  { %70 = vst.msk [vmem:[%s321_s1 + $0x58] sm:$0xff] %vm58_vm0, %v53_v31 }
  0xba   :  { %v108_v32 = vpop.trf.xlu1 }
  0xbb   :  { %v54_v33 = vpop.trf.xlu0  ;;  %146 = vst.msk [vmem:[%s321_s1 + $0xe0] sm:$0xff] %vm58_vm0, %v108_v32 }
  0xbc   :  { %71 = vst.msk [vmem:[%s321_s1 + $0x60] sm:$0xff] %vm58_vm0, %v54_v33 }
  0xbe   :  { %v109_v34 = vpop.trf.xlu1 }
  0xbf   :  { %v55_v35 = vpop.trf.xlu0  ;;  %147 = vst.msk [vmem:[%s321_s1 + $0xe8] sm:$0xff] %vm58_vm0, %v109_v34 }
  0xc0   :  { %72 = vst.msk [vmem:[%s321_s1 + $0x68] sm:$0xff] %vm58_vm0, %v55_v35 }
  0xc2   :  { %v110_v36 = vpop.trf.xlu1 }
  0xc3   :  { %v56_v37 = vpop.trf.xlu0  ;;  %148 = vst.msk [vmem:[%s321_s1 + $0xf0] sm:$0xff] %vm58_vm0, %v110_v36 }
  0xc4   :  { %73 = vst.msk [vmem:[%s321_s1 + $0x70] sm:$0xff] %vm58_vm0, %v56_v37 }
  0xc6   :  { %v111_v38 = vpop.trf.xlu1 }
  0xc7   :  { %v57_v39 = vpop.trf.xlu0  ;;  %149 = vst.msk [vmem:[%s321_s1 + $0xf8] sm:$0xff] %vm58_vm0, %v111_v38 }
  0xc8   :  { %74 = vst.msk [vmem:[%s321_s1 + $0x78] sm:$0xff] %vm58_vm0, %v57_v39 }
  0xc9   :  { %133 = vsyncpa [#allocation3], 1 }

</bundles_post_ra>
